<compile_context>
chip_gen: v7x
topology: tpu7x:2x2x1
jax: 0.10.0
libtpu: 0.0.40
codegen_flags: <defaults>
</compile_context>

<pallas_src>
import jax
import jax.numpy as jnp
import numpy as np
from jax import lax
from jax.experimental import pallas as pl
from jax.experimental.pallas import tpu as pltpu

# Keep the XLA reference in true-f32 so the correctness check is tight.
jax.config.update("jax_default_matmul_precision", "highest")


def cam_kernel(gamma_ref, x_ref, o_ref):
    xf = x_ref[0]                                                  # (C, N) f32

    # energy[c, d] = sum_n x[c, n] * x[d, n]  == X @ X^T; contract the lane
    # axis of both operands directly (MXU takes the transposed RHS natively,
    # no XLU transpose / VMEM relayout).
    energy = lax.dot_general(
        xf, xf,
        dimension_numbers=(((1,), (1,)), ((), ())),
        preferred_element_type=jnp.float32)                        # (C, C)

    # energy_new = rowmax(energy) - energy ; attention = softmax(energy_new).
    # Subtract the row max again for a numerically stable exp.
    energy_new = jnp.max(energy, axis=-1, keepdims=True) - energy
    energy_new = energy_new - jnp.max(energy_new, axis=-1, keepdims=True)
    e = jnp.exp(energy_new)                                        # EUP
    attn = e / jnp.sum(e, axis=-1, keepdims=True)                  # (C, C), tiny

    out = jnp.dot(attn, xf, preferred_element_type=jnp.float32)    # (C, N)

    gamma = gamma_ref[0]                                           # SMEM scalar
    o_ref[0] = (gamma * out + xf).astype(o_ref.dtype)


def cam_pallas(x, gamma):
    """x: (B, C, H, W); gamma: scalar.  Returns (B, C, H, W)."""
    B, C, H, W = x.shape
    N = H * W
    xf = x.reshape(B, C, N)                      # lane-dense token axis
    g = jnp.asarray(gamma, jnp.float32).reshape(1)

    out = pl.pallas_call(
        cam_kernel,
        out_shape=jax.ShapeDtypeStruct((B, C, N), x.dtype),
        grid_spec=pltpu.PrefetchScalarGridSpec(
            num_scalar_prefetch=0,
            grid=(B,),
            in_specs=[
                pl.BlockSpec(memory_space=pltpu.MemorySpace.SMEM),   # gamma
                pl.BlockSpec((1, C, N), lambda b: (b, 0, 0)),        # x (per image)
            ],
            out_specs=pl.BlockSpec((1, C, N), lambda b: (b, 0, 0)),
        ),
        compiler_params=pltpu.CompilerParams(
            dimension_semantics=("parallel",)),    # shard images across TCs (v7x)
    )(g, xf)
    return out.reshape(B, C, H, W)


def cam_ref(x, gamma):
    """Pure-JAX reference (matches PyTorch CAM_Module semantics)."""
    B, C, H, W = x.shape
    q = x.reshape(B, C, H * W)
    energy = jnp.einsum("bcn,bdn->bcd", q, q, precision="highest")
    energy_new = jnp.max(energy, axis=-1, keepdims=True) - energy
    attn = jax.nn.softmax(energy_new, axis=-1)
    out = jnp.einsum("bcd,bdn->bcn", attn, q, precision="highest")
    return gamma * out.reshape(B, C, H, W) + x


if __name__ == "__main__":
    B, C, H, W = 2, 4, 16, 16

    key = jax.random.PRNGKey(0)
    kx, _ = jax.random.split(key)
    x = jax.random.normal(kx, (B, C, H, W), jnp.float32)
    # The module initializes gamma to 0 (which would reduce to out == x);
    # use a non-trivial value so the attention path is actually exercised.
    gamma = jnp.float32(0.7)

    out = cam_pallas(x, gamma)
    out = jax.block_until_ready(out)

    ref = cam_ref(x, gamma)
    np.testing.assert_allclose(np.asarray(out), np.asarray(ref),
                               atol=1e-4, rtol=1e-4)
    print("KERNEL_OK")
</pallas_src>

<mosaic_0001>
module attributes {stable_mosaic.version = 11 : i64} {
  func.func @cam_kernel(%arg0: i32, %arg1: memref<1xf32, #tpu.memory_space<smem>>, %arg2: memref<1x4x256xf32, #tpu.memory_space<vmem>>, %arg3: memref<1x4x256xf32, #tpu.memory_space<vmem>>) attributes {dimension_semantics = [#tpu.dimension_semantics<parallel>], iteration_bounds = array<i64: 2>, scalar_prefetch = 0 : i64, scratch_operands = 0 : i64, tpu.core_type = #tpu.core_type<tc>, window_params = [{transform_indices = @transform_0, window_bounds = array<i64: 1>}, {transform_indices = @transform_1, window_bounds = array<i64: 1, 4, 256>}, {transform_indices = @transform_2, window_bounds = array<i64: 1, 4, 256>}]} {
    %c0 = arith.constant 0 : index
    %c0_0 = arith.constant 0 : index
    %c0_1 = arith.constant 0 : index
    %0 = vector.load %arg2[%c0, %c0_0, %c0_1] : memref<1x4x256xf32, #tpu.memory_space<vmem>>, vector<1x4x256xf32>
    %1 = vector.shape_cast %0 : vector<1x4x256xf32> to vector<4x256xf32>
    %cst = arith.constant dense<0.000000e+00> : vector<4x4xf32>
    %2 = tpu.matmul %1, %1, %cst {dimension_numbers = #tpu.dot_dimension_numbers<[1], [1], [0], [0], [0, 0, 1, 0], [], []>, precision = #tpu.contract_precision<fp32>} : vector<4x256xf32>, vector<4x256xf32>, vector<4x4xf32> -> vector<4x4xf32>
    %cst_2 = arith.constant dense<0xFF800000> : vector<4xf32>
    %3 = vector.multi_reduction <maximumf>, %2, %cst_2 [1] : vector<4x4xf32> to vector<4xf32>
    %4 = vector.shape_cast %3 : vector<4xf32> to vector<4x1xf32>
    %5 = vector.broadcast %4 : vector<4x1xf32> to vector<4x4xf32>
    %6 = arith.subf %5, %2 : vector<4x4xf32>
    %cst_3 = arith.constant dense<0xFF800000> : vector<4xf32>
    %7 = vector.multi_reduction <maximumf>, %6, %cst_3 [1] : vector<4x4xf32> to vector<4xf32>
    %8 = vector.shape_cast %7 : vector<4xf32> to vector<4x1xf32>
    %9 = vector.broadcast %8 : vector<4x1xf32> to vector<4x4xf32>
    %10 = arith.subf %6, %9 : vector<4x4xf32>
    %11 = math.exp %10 : vector<4x4xf32>
    %cst_4 = arith.constant dense<0.000000e+00> : vector<4xf32>
    %12 = vector.multi_reduction <add>, %11, %cst_4 [1] : vector<4x4xf32> to vector<4xf32>
    %13 = vector.shape_cast %12 : vector<4xf32> to vector<4x1xf32>
    %14 = vector.broadcast %13 : vector<4x1xf32> to vector<4x4xf32>
    %15 = arith.divf %11, %14 : vector<4x4xf32>
    %cst_5 = arith.constant dense<0.000000e+00> : vector<4x256xf32>
    %16 = tpu.matmul %15, %1, %cst_5 {dimension_numbers = #tpu.dot_dimension_numbers<[1], [0], [0], [1], [0, 0, 1, 1], [], []>, precision = #tpu.contract_precision<fp32>} : vector<4x4xf32>, vector<4x256xf32>, vector<4x256xf32> -> vector<4x256xf32>
    %c0_6 = arith.constant 0 : index
    %17 = memref.load %arg1[%c0_6] : memref<1xf32, #tpu.memory_space<smem>>
    %18 = vector.broadcast %17 : f32 to vector<4x256xf32>
    %19 = arith.mulf %18, %16 : vector<4x256xf32>
    %20 = arith.addf %19, %1 : vector<4x256xf32>
    %c0_7 = arith.constant 0 : index
    %c0_8 = arith.constant 0 : index
    %c0_9 = arith.constant 0 : index
    %21 = vector.load %arg3[%c0_7, %c0_8, %c0_9] : memref<1x4x256xf32, #tpu.memory_space<vmem>>, vector<1x4x256xf32>
    %22 = vector.shape_cast %21 : vector<1x4x256xf32> to vector<4x256xf32>
    %23 = vector.shape_cast %20 : vector<4x256xf32> to vector<1x4x256xf32>
    tpu.vector_store %arg3[%c0_7, %c0_8, %c0_9], %23 {strides = array<i32>} : memref<1x4x256xf32, #tpu.memory_space<vmem>>, vector<1x4x256xf32>,
    return
  }
  func.func @transform_0(%arg0: i32) -> i32 {
    %c0_i32 = arith.constant 0 : i32
    %c0_i32_0 = arith.constant 0 : i32
    return %c0_i32 : i32
  }
  func.func @transform_1(%arg0: i32) -> (i32, i32, i32) {
    %c0_i32 = arith.constant 0 : i32
    %c0_i32_0 = arith.constant 0 : i32
    %c0_i32_1 = arith.constant 0 : i32
    return %arg0, %c0_i32, %c0_i32_0 : i32, i32, i32
  }
  func.func @transform_2(%arg0: i32) -> (i32, i32, i32) {
    %c0_i32 = arith.constant 0 : i32
    %c0_i32_0 = arith.constant 0 : i32
    %c0_i32_1 = arith.constant 0 : i32
    return %arg0, %c0_i32, %c0_i32_0 : i32, i32, i32
  }
}

</mosaic_0001>

<bundles_post_ra>
// kernel: tpu_custom_call.1
= control target key start
LH: loop header
LB: loop body
LE: loop exit
PB: predicated region body
PF: predicated region fallthrough
CT: control target
= control target key end

     0   :  { %s1609_s0 = inlined_call_operand.<no memory space> [shape: f32[1], index: 0, kind: input, shape index: {}]   ;;  %s1610_s1 = inlined_call_operand.hbm [shape: f32[2,4,256], index: 1, kind: input, shape index: {}]   ;;  %s1611_s2 = inlined_call_operand.hbm [shape: f32[2,4,256], index: 2, kind: output, shape index: {}]  }
   0x1   :  { %7 = sst [smem:[#allocation2]] %s1609_s0 }
   0x2   :  { %8 = vsyncpa [#allocation4], 0 }
   0x3   :  { %10 = vsyncpa [#allocation4 + $0x1], 0 }
   0x4   :  { %11 = vsyncpa [#allocation5], 0 }
   0x5   :  { %13 = vsyncpa [#allocation5 + $0x1], 0  ;;  %s1430_s11 = smov 0   ;;  %s1432_s12 = smov 0  }
   0x6   :  { %s1434_s13 = smov 0   ;;  %s1436_s14 = smov 0  }
   0x7 LB: > { %s1451_s0 = sadd.s32 4294967295, %s1407_s14   ;;  %s1223_s15 = sadd.s32 4294967294, %s1407_s14   ;;  %s1407_s14 = sphi %s1436_s14, %s1626_s14   ;;  %s1403_s13 = sphi %s1434_s13, %s1625_s13   ;;  %s1399_s12 = sphi %s1432_s12, %s1624_s12   ;;  %s1395_s11 = sphi %s1430_s11, %s1623_s11  }
   0x8   : > { %s1455_s16 = sadd.s32 1, %s1407_s14   ;;  %s47_s17 = sadd.s32 1, %s1403_s13 }
   0x9   : > { %s44_s18 = ssub.s32 %s1407_s14, %s1455_s16  ;;  %p54_p0 = scmp.ne.s32.totalorder %s1403_s13, %s1399_s12 }
   0xa   : > { %p45_p1 = scmp.eq.s32.totalorder %s44_s18, 0  ;;  %p55_p2 = scmp.eq.s32.totalorder %s1407_s14, 0 }
   0xb   : > { %p60_p3 = scmp.ne.s32.totalorder %s1399_s12, %s1395_s11  ;;  %p61_p4 = scmp.eq.s32.totalorder %s1451_s0, 0 }
   0xc   : > { %s1467_s19 = scalar_select %p45_p1, %s1403_s13, %s47_s17  }
   0xd   : > { %p1469_p5 = por %p55_p2, %p54_p0  ;;  %p1473_p6 = por %p61_p4, %p60_p3 }
   0xe   : > { %p84_p7 = scmp.eq.s32.totalorder %s1451_s0, 1  ;;  %p90_p8 = scmp.eq.s32.totalorder %s1223_s15, 1 }
   0xf   : > { %p1271_p10 = scmp.lt.s32.totalorder %s1407_s14, 2  ;;  %s113_s24 = sand.u32 1, %s1403_s13  }
  0x10   : > { %p1480_p11 = por %p84_p7, %p54_p0  ;;  %p1484_p12 = por %p90_p8, %p60_p3 }
  0x11   : > { %s1237_s25 = sshll.u32 %s1407_s14, 7  ;;  %s1226_s26 = sshll.u32 %s113_s24, 3 }
  0x12   : > { %s1615_s22 = scalar_select %p1480_p11, 1, 0 }
  0x13   : > { %s1616_s23 = scalar_select %p1484_p12, 1, 0 }
  0x14   : > { %s1493_s29 = scalar_lea.hbm %s1610_s1, %s1237_s25  ;;  %s117_s30 = scalar_lea.vmem [#allocation3], %s1226_s26 }
  0x15   : > { %s125_s3 = sshll.u32 %s117_s30, 4  ;;  %p1497_p13 = pnand %p1271_p10, %p1469_p5  ;;  %s1501_s3 = int_to_ptr.vmem [resolvable:$true] %s125_s3 }
  0x16   : > { %s114_s5 = scalar_lea.sflag [#allocation4], %s113_s24  ;;  %s1311_s6 = scalar_lea.hbm %s1493_s29, 128 }
  0x17   : > { %p1312_p2 = scmp.ne.s32.totalorder %s1493_s29, %s1311_s6  ;;  %p1313_p3 = pneg %p1497_p13 }
  0x18   : > { %s1316_s9 = scalar_lea.hbm %s1610_s1, 256  ;;  %p1317_p5 = scmp.lt.u32.totalorder %s1493_s29, %s1610_s1 }
  0x19   : > { %p1314_p4 = pnand %p1313_p3, %p1312_p2  ;;  %p1318_p8 = scmp.lt.u32.totalorder %s1316_s9, %s1311_s6 }
  0x1a   : > { %p1320_p9 = scmp.lt.u32.totalorder %s1311_s6, %s1493_s29 }
  0x1b   : > { %p1315_p7 = pneg %p1314_p4  ;;  %p1319_p10 = por %p1318_p8, %p1317_p5 }
  0x1d   : > { %p1321_p0 = por %p1320_p9, %p1319_p10 }
  0x1f   : > { %p1322_p1 = pnand %p1321_p0, %p1315_p7 }
  0x21   : > { %1325 = shalt.err (!%p1322_p1)
}
  0x22   : > { %s1326_s17 = scalar_lea.vmem %s1501_s3, 128  ;;  %s1409_s18 = smov [#allocation3]  }
  0x23   : > { %p1327_p2 = scmp.ne.s32.totalorder %s1501_s3, %s1326_s17  ;;  %s1331_s20 = sshll.u32 %s1409_s18, 4  ;;  %s1332_s20 = int_to_ptr.vmem [resolvable:$false] %s1331_s20 }
  0x24   : > { %s1333_s24 = scalar_lea.vmem %s1332_s20, 256  ;;  %p1334_p11 = scmp.lt.s32.totalorder %s1501_s3, %s1332_s20 }
  0x25   : > { %p1329_p4 = pnand %p1327_p2, %p1313_p3  ;;  %p1335_p5 = scmp.lt.s32.totalorder %s1333_s24, %s1326_s17 }
  0x27   : > { %p1330_p12 = pneg %p1329_p4  ;;  %p1336_p8 = por %p1335_p5, %p1334_p11 }
  0x29   : > { %p1337_p9 = pnand %p1336_p8, %p1330_p12 }
  0x2b   : > { %1340 = shalt.err (!%p1337_p9)
}
  0x2c   : > { %1266 = dma.hbm_to_vmem [thread:$0]  (!%p1497_p13), %s1493_s29, 128, %s1501_s3, %s114_s5  }
  0x2d   : > { %p1618_p0 = scmp.lt.s32.totalorder %s1407_s14, 3  ;;  %p1619_p1 = scmp.ge.s32.totalorder %s1407_s14, 1 }
  0x2f   : > { %p131_p3 = pnand %p1619_p1, %p1618_p0 }
  0x30   : > { %s1535_s25 = sand.u32 (!%p131_p3), 1, %s1399_s12  }
  0x31   : > { %134 = sbr.rel (%p131_p3) target bundleno = 1066 (0x42a), region = 28  ;;  %s1230_s26 = sshll.u32 (!%p131_p3), %s1535_s25, 3 }
  0x32   : > { %s137_s27 = scalar_lea.sflag (!%p131_p3), [#allocation4], %s1535_s25  ;;  %s140_s28 = scalar_lea.vmem (!%p131_p3), [#allocation3], %s1230_s26 }
  0x38   : > { %1386 = dma.done.wait (%p1473_p6), %s137_s27, 128  }
  0x39   : > { %1388 = vsyncadd (%p1473_p6), %s137_s27, 4294967168  ;;  %v1545_v0 = vld [vmem:[%s140_s28] sm:$0xff]  ;;  %vm637_vm0 = vcmask 27648   ;;  %vm657_vm1 = vcmask 1043456   ;;  %v1410_v25 = vmov 0.0   ;;  %vm653_vm2 = vcmask 31744  }
  0x3a   : > { %v1549_v1 = vcombine.high %v1545_v0, %v1545_v0  ;;  %v167_v2 = vand.u32 4294901760, %v1545_v0  ;;  %v658_v24 = vsel %vm657_vm1, %v1545_v0, 0  ;;  %728 = vmatprep.mubr.f32.mxu1 %v1410_v25  ;;  %s1127_s21 = sld [smem:[#allocation2]]  ;;  %s1238_s29 = sshll.u32 %s1451_s0, 7 }
  0x3b   : > { %v664_v27 = vand.u32 4294901760, %v658_v24  ;;  %s160_s30 = scalar_lea.vmem [#allocation6], %s1230_s26  ;;  %s1565_s6 = scalar_lea.hbm %s1611_s2, %s1238_s29 }
  0x3c   : > { %v165_v3 = vand.u32 4294901760, %v1549_v1  ;;  %v238_v4 = vsub.f32 %v1545_v0, %v167_v2  ;;  %v660_v23 = vsel %vm657_vm1, %v1549_v1, 0  ;;  %s1153_s3 = sshll.u32 %s160_s30, 4  ;;  %s1139_s7 = scalar_lea.sflag [#allocation5], %s1535_s25  ;;  %s1567_s3 = int_to_ptr.vmem [resolvable:$true] %s1153_s3 }
  0x3d   : > { %v662_v26 = vand.u32 4294901760, %v660_v23  ;;  %v747_v33 = vsub.f32 %v658_v24, %v664_v27  ;;  %s1341_s8 = scalar_lea.vmem %s1567_s3, 128  ;;  %p1620_p11 = scmp.ne.s32.totalorder %s1615_s22, 0 }
  0x3e   : > { %166 = vmatprep.subr.mxu0 %v165_v3  ;;  %v232_v5 = vsub.f32 %v1549_v1, %v165_v3  ;;  %v239_v6 = vand.u32 4294901760, %v238_v4  ;;  %p1342_p6 = scmp.ne.s32.totalorder %s1567_s3, %s1341_s8  ;;  %s1411_s0 = smov [#allocation6]  }
  0x3f   : > { %168 = vmatpush1.xpose.msra.mxu0 %v167_v2  ;;  %663 = vmatprep.subr.mxu1 %v662_v26  ;;  %v741_v28 = vsub.f32 %v660_v23, %v662_v26  ;;  %v748_v37 = vand.u32 4294901760, %v747_v33  ;;  %s1345_s9 = sshll.u32 %s1411_s0, 4  ;;  %s1346_s9 = int_to_ptr.vmem [resolvable:$false] %s1345_s9 }
  0x40   : > { %v233_v7 = vand.u32 4294901760, %v232_v5  ;;  %v240_v8 = vsub.f32 %v238_v4, %v239_v6  ;;  %665 = vmatpush1.msra.mxu1 %v664_v27  ;;  %v1128_v45 = vstv %s1127_s21  ;;  %p1343_p12 = pnand %p1342_p6, %p1620_p11  ;;  %s1347_s10 = scalar_lea.vmem %s1346_s9, 256 }
  0x41   : > { %v742_v29 = vand.u32 4294901760, %v741_v28  ;;  %v749_v40 = vsub.f32 %v747_v33, %v748_v37  ;;  %p1348_p7 = scmp.lt.s32.totalorder %s1567_s3, %s1346_s9  ;;  %p1349_p10 = scmp.lt.s32.totalorder %s1347_s10, %s1341_s8 }
  0x42   : > { %v234_v9 = vsub.f32 %v232_v5, %v233_v7  ;;  %v241_v10 = vand.u32 4294901760, %v240_v8  ;;  %p1344_p13 = pneg %p1343_p12 }
  0x43   : > { %v743_v30 = vsub.f32 %v741_v28, %v742_v29  ;;  %v750_v43 = vand.u32 4294901760, %v749_v40  ;;  %p1350_p2 = por %p1349_p10, %p1348_p7 }
  0x44   : > { %v235_v11 = vand.u32 4294901760, %v234_v9 }
  0x45   : > { %v744_v31 = vand.u32 4294901760, %v743_v30  ;;  %p1351_p4 = pnand %p1350_p2, %p1344_p13 }
  0x46   : > { %236 = vmatprep.mubr.f32.mxu0 %v235_v11  ;;  %252 = vmatprep.subr.mxu0 %v235_v11 }
  0x47   : > { %242 = vmatmul.mubr.f32.vlgmr.msra.gmra.mrb[0].mxu0 %v241_v10  ;;  %745 = vmatprep.subr.mxu1 %v744_v31 }
  0x48   : > { %258 = vmatpush1.xpose.msra.mxu0 %v241_v10  ;;  %322 = vmatprep.mubr.f32.mxu0 %v165_v3 }
  0x49   : > { %331 = vmatprep.subr.mxu0 %v232_v5 }
  0x4f   : > { %324 = vmatmul.mubr.f32.vlgmr.msra.gmra.mrb[0].mxu0 %v167_v2 }
  0x50   : > { %334 = vmatpush1.xpose.msra.mxu0 %v238_v4  ;;  %399 = vmatprep.mubr.f32.mxu0 %v232_v5 }
  0x51   : > { %408 = vmatprep.subr.mxu0 %v165_v3 }
  0x57   : > { %402 = vmatmul.mubr.f32.vlgmr.msra.gmra.mrb[0].mxu0 %v238_v4 }
  0x58   : > { %410 = vmatpush1.xpose.msra.mxu0 %v167_v2  ;;  %476 = vmatprep.mubr.f32.mxu0 %v233_v7 }
  0x59   : > { %488 = vmatprep.subr.mxu0 %v233_v7 }
  0x5f   : > { %480 = vmatmul.mubr.f32.vlgmr.msra.gmra.mrb[0].mxu0 %v239_v6 }
  0x60   : > { %492 = vmatpush1.xpose.msra.mxu0 %v239_v6  ;;  %556 = vmatprep.mubr.f32.mxu0 %v165_v3 }
  0x61   : > { %564 = vmatprep.subr.mxu0 %v165_v3 }
  0x67   : > { %558 = vmatmul.mubr.f32.vlgmr.msra.gmra.mrb[0].mxu0 %v167_v2 }
  0x68   : > { %566 = vmatpush1.xpose.msra.mxu0 %v167_v2  ;;  %630 = vmatprep.mubr.f32.mxu0 %v165_v3 }
  0x6f   : > { %632 = vmatmul.mubr.f32.vlgmr.msra.gmra.mrb[0].mxu0 %v167_v2 }
 0x142   : > { %v633_v12 = vpop.f32.mrb[0].mxu0 }
 0x143   : > { %v635_v13 = vpop.f32.mrb[1].mxu0  ;;  %v638_v14 = vsel %vm637_vm0, %v633_v12, -inf }
 0x144   : > { %639 = vmax.xlane.f32.xlu0 %v638_v14 }
 0x1d1   : > { %v640_v15 = vpop.xlane.xlu0 %639 }
 0x1d2   : > { %v641_v16 = vsub.f32 %v640_v15, %v633_v12 }
 0x1d4   : > { %v642_v17 = vsel %vm637_vm0, %v641_v16, -inf }
 0x1d5   : > { %643 = vmax.xlane.f32.xlu0 %v642_v17 }
 0x262   : > { %v644_v18 = vpop.xlane.xlu0 %643 }
 0x263   : > { %v645_v19 = vsub.f32 %v641_v16, %v644_v18 }
 0x265   : > { %v646_v20 = vmul.f32 1.442695, %v645_v19 }
 0x267   : > { %1307 = vpow2.f32 %v646_v20 }
 0x271   : > { %v1308_v21 = vpop.eup %1307 }
 0x272   : > { %v648_v22 = vsel %vm637_vm0, %v1308_v21, 0.0 }
 0x273   : > { %649 = vadd.xlane.f32.xlu1 %v648_v22 }
 0x300   : > { %v650_v32 = vpop.xlane.xlu1 %649 }
 0x301   : > { %1309 = vrcp.f32 %v650_v32 }
 0x30b   : > { %v1310_v34 = vpop.eup %1309 }
 0x30c   : > { %v652_v35 = vmul.f32 %v1310_v34, %v1308_v21 }
 0x30e   : > { %v655_v36 = vsel %vm653_vm2, %v652_v35, 0 }
 0x30f   : > { %v729_v38 = vand.u32 4294901760, %v655_v36 }
 0x311   : > { %v730_v39 = vsub.f32 %v655_v36, %v729_v38 }
 0x313   : > { %v731_v41 = vand.u32 4294901760, %v730_v39 }
 0x315   : > { %v732_v42 = vsub.f32 %v730_v39, %v731_v41 }
 0x317   : > { %v733_v44 = vand.u32 4294901760, %v732_v42 }
 0x319   : > { %734 = vmatmul.mubr.f32.vlgmr.msra.gmra.mrb[0].mxu1 %v733_v44 }
 0x31a   : > { %751 = vmatpush1.msra.mxu1 %v750_v43  ;;  %814 = vmatprep.mubr.f32.mxu1 %v1410_v25 }
 0x31b   : > { %824 = vmatprep.subr.mxu1 %v741_v28 }
 0x321   : > { %816 = vmatmul.mubr.f32.vlgmr.msra.gmra.mrb[0].mxu1 %v729_v38 }
 0x322   : > { %827 = vmatpush1.msra.mxu1 %v747_v33  ;;  %890 = vmatprep.mubr.f32.mxu1 %v1410_v25 }
 0x323   : > { %900 = vmatprep.subr.mxu1 %v662_v26 }
 0x329   : > { %893 = vmatmul.mubr.f32.vlgmr.msra.gmra.mrb[0].mxu1 %v730_v39 }
 0x32a   : > { %902 = vmatpush1.msra.mxu1 %v664_v27  ;;  %965 = vmatprep.mubr.f32.mxu1 %v1410_v25 }
 0x32b   : > { %978 = vmatprep.subr.mxu1 %v742_v29 }
 0x331   : > { %969 = vmatmul.mubr.f32.vlgmr.msra.gmra.mrb[0].mxu1 %v731_v41 }
 0x332   : > { %982 = vmatpush1.msra.mxu1 %v748_v37  ;;  %1045 = vmatprep.mubr.f32.mxu1 %v1410_v25 }
 0x333   : > { %1054 = vmatprep.subr.mxu1 %v662_v26 }
 0x339   : > { %1047 = vmatmul.mubr.f32.vlgmr.msra.gmra.mrb[0].mxu1 %v729_v38 }
 0x33a   : > { %1056 = vmatpush1.msra.mxu1 %v664_v27  ;;  %1119 = vmatprep.mubr.f32.mxu1 %v1410_v25 }
 0x341   : > { %1121 = vmatmul.mubr.f32.vlgmr.msra.gmra.mrb[0].mxu1 %v729_v38 }
 0x414   : > { %v1122_v46 = vpop.f32.mrb[0].mxu1 }
 0x415   : > { %v1129_v47 = vmul.f32 %v1128_v45, %v1122_v46  ;;  %v1124_v48 = vpop.f32.mrb[1].mxu1 }
 0x416   : > { %v1130_v49 = vmul.f32 %v1128_v45, %v1124_v48 }
 0x417   : > { %v1131_v50 = vadd.f32 %v1129_v47, %v1545_v0 }
 0x418   : > { %v1132_v51 = vadd.f32 %v1130_v49, %v1549_v1 }
 0x41a   : > { %v1135_v52 = vcombine.low %v1131_v50, %v1132_v51 }
 0x41c   : > { %1137 = vst [vmem:[%s160_s30] sm:$0xff] %v1135_v52 }
 0x41d   : > { %1354 = shalt.err (!%p1351_p4)
}
 0x41e   : > { %s1355_s15 = scalar_lea.hbm %s1565_s6, 128  ;;  %s1359_s20 = scalar_lea.hbm %s1611_s2, 256 }
 0x41f   : > { %p1356_p5 = scmp.ne.s32.totalorder %s1565_s6, %s1355_s15  ;;  %p1360_p0 = scmp.lt.u32.totalorder %s1565_s6, %s1611_s2 }
 0x420   : > { %p1361_p1 = scmp.lt.u32.totalorder %s1359_s20, %s1355_s15  ;;  %p1363_p6 = scmp.lt.u32.totalorder %s1355_s15, %s1565_s6 }
 0x421   : > { %p1357_p8 = pnand %p1356_p5, %p1620_p11 }
 0x422   : > { %p1362_p3 = por %p1361_p1, %p1360_p0 }
 0x423   : > { %p1358_p9 = pneg %p1357_p8 }
 0x424   : > { %p1364_p12 = por %p1363_p6, %p1362_p3 }
 0x426   : > { %p1365_p13 = pnand %p1364_p12, %p1358_p9 }
 0x428   : > { %1368 = shalt.err (!%p1365_p13)
}
 0x429   : > { %1261 = dma.vmem_to_hbm [thread:$0]  (%p1620_p11), %s1567_s3, 128, %s1565_s6, %s1139_s7  }
 0x42a PF: > { %s1165_s26 = sand.u32 1, %s1395_s11   ;;  %p1621_p7 = scmp.ne.s32.totalorder %s1616_s23, 0 }
 0x42b   : > { %p1622_p10 = scmp.ge.s32.totalorder %s1407_s14, 2  ;;  %s1166_s27 = scalar_lea.sflag [#allocation5], %s1165_s26 }
 0x42d   : > { %p1268_p2 = pnand %p1622_p10, %p1621_p7 }
 0x42f   : > { %1390 = dma.done.wait (!%p1268_p2), %s1166_s27, 128  }
 0x430   : > { %1392 = vsyncadd (!%p1268_p2), %s1166_s27, 4294967168  ;;  %p16_p4 = scmp.ge.s32.totalorder %s1455_s16, 4   ;;  %s1623_s11 = smov %s1399_s12 }
 0x431   : > { %s1624_s12 = smov %s1403_s13  ;;  %s1625_s13 = smov %s1467_s19 }
 0x432   : > { %s1626_s14 = smov %s1455_s16  ;;  %18 = sbr.rel (!%p16_p4) target bundleno = 7 (0x7), region = 73 }
 0x439   :  { %1171 = vsyncpa [#allocation4], 1 }
 0x43a   :  { %1173 = vsyncpa [#allocation4 + $0x1], 1 }
 0x43b   :  { %1174 = vsyncpa [#allocation5], 1 }
 0x43c   :  { %1176 = vsyncpa [#allocation5 + $0x1], 1 }

</bundles_post_ra>
